<compile_context>
chip_gen: v7x
topology: tpu7x:2x2x1
jax: 0.10.0
libtpu: 0.0.40
codegen_flags: <defaults>
</compile_context>

<pallas_src>
import math
from functools import partial

import jax
import jax.numpy as jnp
from jax.experimental import pallas as pl
from jax.experimental.pallas import tpu as pltpu


def _round_up(a, b):
    return ((a + b - 1) // b) * b


def _vmem_limit_bytes():
    """Per-generation scoped-VMEM budget (v5e/v6e: 128 MiB phys, v7x: 64 MiB)."""
    try:
        phys = int(pltpu.get_tpu_info().vmem_capacity_bytes)
    except Exception:                       # conservative (v7x-sized) fallback
        phys = 64 * 1024 * 1024
    return min(phys * 3 // 4, 100 * 1024 * 1024)


def _resident_spec(shape, index_map):
    """Input whose block index never changes: single-buffer it if supported."""
    try:
        return pl.BlockSpec(shape, index_map, pipeline_mode=pl.Buffered(1))
    except Exception:
        return pl.BlockSpec(shape, index_map)


# ----------------------------------------------------------------------------
# Kernel 1: fused projection — Wh (bf16), wh1, wh2^T as separate outputs
# ----------------------------------------------------------------------------
def _proj_kernel(x_ref, w_ref, a1_ref, a2t_ref, wh_ref, wh1_ref, wh2t_ref):
    x = x_ref[...]                                            # (br, F) f32
    wh = jnp.dot(x, w_ref[...], preferred_element_type=jnp.float32)
    wh_ref[...] = wh.astype(wh_ref.dtype)                     # bf16 value stream
    wh1_ref[...] = jnp.dot(x, a1_ref[...],
                           preferred_element_type=jnp.float32)  # (br, H)
    # wh2 is emitted already transposed, (H, br), lane-dense store; kernel 2
    # then broadcasts it along lanes without any per-step transpose.
    wh2t_ref[...] = jnp.einsum('hf,nf->hn', a2t_ref[...], x,
                               preferred_element_type=jnp.float32)


# ----------------------------------------------------------------------------
# Kernel 2: column-tiled online-softmax attention + bf16 aggregation
# ----------------------------------------------------------------------------
def _attn_kernel(wh1_ref, wh2t_ref, whv_ref, adj_ref, o_ref,
                 m_scr, l_scr, acc_scr, *, alpha, nheads, nhid):
    # wh1_ref : (br, H)   f32   per-row  Wh_h @ a1_h       (constant over j)
    # wh2t_ref: (H, bc)   f32   per-node Wh_h @ a2_h       (column block j)
    # whv_ref : (bc, D)   bf16  Wh for all heads           (column block j)
    # adj_ref : (br, bc)  f32   adjacency tile             (i, j)
    # o_ref   : (br, D)   f32   concatenated-head output   (written at last j)
    j = pl.program_id(1)
    last_j = pl.num_programs(1) - 1

    @pl.when(j == 0)
    def _init():
        m_scr[...] = jnp.full(m_scr.shape, -jnp.inf, m_scr.dtype)
        l_scr[...] = jnp.zeros(l_scr.shape, l_scr.dtype)
        acc_scr[...] = jnp.zeros(acc_scr.shape, acc_scr.dtype)

    neg_slope = jnp.float32(alpha)           # 0 <= alpha <= 1 assumed (LeakyReLU)
    neg_big = jnp.float32(-9e15)
    mask = adj_ref[...] > 0.0                # (br, bc), shared across heads
    wh1 = wh1_ref[...]                       # (br, H)
    wh2t = wh2t_ref[...]                     # (H, bc)
    m_prev = m_scr[...]                      # (br, H)
    l_prev = l_scr[...]                      # (br, H)

    m_cols, l_cols, acc_cols = [], [], []
    for h in range(nheads):                  # small static unroll
        s = wh1[:, h:h + 1] + wh2t[h:h + 1, :]                 # (br, bc)
        e = jnp.maximum(s, neg_slope * s)                      # LeakyReLU
        logits = jnp.where(mask, e, neg_big)
        m_blk = jnp.max(logits, axis=1, keepdims=True)         # (br, 1)
        m_old = m_prev[:, h:h + 1]
        m_new = jnp.maximum(m_old, m_blk)
        corr = jnp.exp(m_old - m_new)                          # (br, 1)
        p = jnp.exp(logits - m_new)                            # (br, bc)
        l_new = corr * l_prev[:, h:h + 1] + jnp.sum(p, axis=1, keepdims=True)
        pv = jnp.dot(p.astype(whv_ref.dtype),                  # bf16 MXU inputs
                     whv_ref[:, h * nhid:(h + 1) * nhid],
                     preferred_element_type=jnp.float32)       # (br, nhid)
        acc_new = corr * acc_scr[:, h * nhid:(h + 1) * nhid] + pv
        m_cols.append(m_new)
        l_cols.append(l_new)
        acc_cols.append(acc_new)

    m_scr[...] = jnp.concatenate(m_cols, axis=1)
    l_scr[...] = jnp.concatenate(l_cols, axis=1)
    acc_scr[...] = jnp.concatenate(acc_cols, axis=1)

    @pl.when(j == last_j)
    def _finalize():
        outs = []
        for h in range(nheads):
            y = acc_cols[h] * pl.reciprocal(l_cols[h], approx=True)
            # ELU (concat=True head); exp(min(x,0))-1 keeps lowering simple
            outs.append(jnp.where(y > 0, y, jnp.exp(jnp.minimum(y, 0.0)) - 1.0))
        # one full-width, lane-dense store per row block
        o_ref[...] = jnp.concatenate(outs, axis=1).astype(o_ref.dtype)


# ----------------------------------------------------------------------------
# Wrapper
# ----------------------------------------------------------------------------
def gat_forward(x, adj, W, a1, a2, *, alpha, block_rows=256, block_cols=512):
    """x:(N,F)  adj:(N,N)  W:(H,F,nhid)  a1,a2:(H,nhid,1)  ->  (N, H*nhid)."""
    N, F = x.shape
    nheads, _, nhid = W.shape
    D = nheads * nhid

    # Fold all heads into one wide projection; fold a1/a2 into per-head columns
    # (parameter-sized preprocessing, done once).
    W_cat = jnp.transpose(W, (1, 0, 2)).reshape(F, D).astype(jnp.float32)   # (F, D)
    A1 = jnp.einsum('hfk,hk->fh', W, a1[:, :, 0]).astype(jnp.float32)       # (F, H)
    A2T = jnp.einsum('hfk,hk->hf', W, a2[:, :, 0]).astype(jnp.float32)      # (H, F)

    # ---- generation-aware tiling --------------------------------------------
    vmem_limit = _vmem_limit_bytes()
    Np128 = _round_up(N, 128)
    br = _round_up(min(block_rows, Np128), 128)
    bc = _round_up(min(block_cols, Np128), 128)
    if br > 128 and Np128 // br < 2:          # give both v7x TensorCores rows
        br = max(128, ((Np128 // 2) // 128) * 128)

    def _k2_step_bytes(br_, bc_):             # rough per-step working set
        streamed = 2 * (br_ * bc_ * 4 + bc_ * D * 2 + nheads * bc_ * 4
                        + br_ * nheads * 4)
        resident = 2 * br_ * D * 4 + br_ * (D + 2 * nheads) * 4
        temps = 4 * br_ * bc_ * 4
        return streamed + resident + temps

    while bc > 128 and _k2_step_bytes(br, bc) > vmem_limit // 2:
        bc = max(128, ((bc // 2) // 128) * 128)

    N_pad = _round_up(N, math.lcm(br, bc))
    num_row, num_col = N_pad // br, N_pad // bc

    xp = jnp.pad(x.astype(jnp.float32), ((0, N_pad - N), (0, 0)))
    # adj streamed as f32; the >0 compare happens in-kernel (no extra XLA pass).
    adjp = jnp.pad(adj.astype(jnp.float32), ((0, N_pad - N), (0, N_pad - N)))

    cparams1 = pltpu.CompilerParams(dimension_semantics=("parallel",),
                                    vmem_limit_bytes=vmem_limit)
    cparams2 = pltpu.CompilerParams(dimension_semantics=("parallel", "arbitrary"),
                                    vmem_limit_bytes=vmem_limit)

    # ---- kernel 1: projection ------------------------------------------------
    wh_bf16, wh1, wh2t = pl.pallas_call(
        _proj_kernel,
        out_shape=(
            jax.ShapeDtypeStruct((N_pad, D), jnp.bfloat16),
            jax.ShapeDtypeStruct((N_pad, nheads), jnp.float32),
            jax.ShapeDtypeStruct((nheads, N_pad), jnp.float32),
        ),
        grid_spec=pltpu.PrefetchScalarGridSpec(
            num_scalar_prefetch=0,
            grid=(num_row,),
            in_specs=[
                pl.BlockSpec((br, F), lambda i: (i, 0)),          # x row slab
                _resident_spec((F, D), lambda i: (0, 0)),         # W_cat
                _resident_spec((F, nheads), lambda i: (0, 0)),    # A1
                _resident_spec((nheads, F), lambda i: (0, 0)),    # A2^T
            ],
            out_specs=[
                pl.BlockSpec((br, D), lambda i: (i, 0)),          # Wh (bf16)
                pl.BlockSpec((br, nheads), lambda i: (i, 0)),     # wh1
                pl.BlockSpec((nheads, br), lambda i: (0, i)),     # wh2^T
            ],
        ),
        compiler_params=cparams1,
    )(xp, W_cat, A1, A2T)

    # ---- kernel 2: online-softmax attention + aggregation --------------------
    out = pl.pallas_call(
        partial(_attn_kernel, alpha=float(alpha), nheads=nheads, nhid=nhid),
        out_shape=jax.ShapeDtypeStruct((N_pad, D), jnp.float32),
        grid_spec=pltpu.PrefetchScalarGridSpec(
            num_scalar_prefetch=0,
            grid=(num_row, num_col),
            in_specs=[
                pl.BlockSpec((br, nheads), lambda i, j: (i, 0)),   # wh1 row slab
                pl.BlockSpec((nheads, bc), lambda i, j: (0, j)),   # wh2^T col blk
                pl.BlockSpec((bc, D), lambda i, j: (j, 0)),        # Wh col blk
                pl.BlockSpec((br, bc), lambda i, j: (i, j)),       # adj tile
            ],
            out_specs=pl.BlockSpec((br, D), lambda i, j: (i, 0)),
            scratch_shapes=[
                pltpu.VMEM((br, nheads), jnp.float32),   # running max m
                pltpu.VMEM((br, nheads), jnp.float32),   # running denom l
                pltpu.VMEM((br, D), jnp.float32),        # running numerator
            ],
        ),
        compiler_params=cparams2,
    )(wh1, wh2t, wh_bf16, adjp)

    return out[:N]


# ----------------------------------------------------------------------------
# Plain-JAX reference (mirrors the PyTorch per-head formulation, eval mode)
# ----------------------------------------------------------------------------
def gat_reference(x, adj, W, a1, a2, *, alpha):
    heads = []
    for h in range(W.shape[0]):
        Wh = x @ W[h]
        e = Wh @ a1[h] + (Wh @ a2[h]).T
        e = jnp.where(e > 0, e, alpha * e)
        logits = jnp.where(adj > 0, e, -9e15)
        att = jax.nn.softmax(logits, axis=1)
        hp = att @ Wh
        heads.append(jnp.where(hp > 0, hp, jnp.expm1(hp)))
    return jnp.concatenate(heads, axis=1)


if __name__ == "__main__":
    # small deterministic config; N deliberately NOT a multiple of 128 so the
    # padding / masking path is exercised.
    N, nfeat, nhid, nheads = 300, 128, 32, 4
    alpha = 0.2  # LeakyReLU negative slope

    key = jax.random.PRNGKey(0)
    kx, kadj, kw, ka1, ka2 = jax.random.split(key, 5)

    x = jax.random.normal(kx, (N, nfeat), dtype=jnp.float32)
    # random symmetric-ish binary adjacency with self loops
    adj_rand = jax.random.uniform(kadj, (N, N)) > 0.9
    adj = (adj_rand | adj_rand.T | jnp.eye(N, dtype=bool)).astype(jnp.float32)

    W = jax.random.normal(kw, (nheads, nfeat, nhid), dtype=jnp.float32) * 0.1
    a1 = jax.random.normal(ka1, (nheads, nhid, 1), dtype=jnp.float32) * 0.1
    a2 = jax.random.normal(ka2, (nheads, nhid, 1), dtype=jnp.float32) * 0.1

    # small tiles so the demo runs multiple row blocks (megacore axis) and
    # multiple column blocks (online-softmax accumulate + finalize path).
    out = gat_forward(x, adj, W, a1, a2, alpha=alpha,
                      block_rows=128, block_cols=128)
    out = jax.block_until_ready(out)

    ref = gat_reference(x, adj, W, a1, a2, alpha=alpha)
    assert out.shape == (N, nheads * nhid)
    # tolerance absorbs bf16 MXU operands in att @ Wh, the approx-reciprocal
    # softmax denominator, and exp(min(x,0))-1 vs expm1 in the ELU
    assert jnp.allclose(out, ref, atol=2e-2, rtol=2e-2), (
        "mismatch vs reference, max abs err = "
        f"{float(jnp.max(jnp.abs(out - ref)))}")

    print("KERNEL_OK")
</pallas_src>

<mosaic_0001>
module attributes {stable_mosaic.version = 11 : i64} {
  func.func @_proj_kernel(%arg0: i32, %arg1: memref<128x128xf32, #tpu.memory_space<vmem>>, %arg2: memref<128x128xf32, #tpu.memory_space<vmem>>, %arg3: memref<128x4xf32, #tpu.memory_space<vmem>>, %arg4: memref<4x128xf32, #tpu.memory_space<vmem>>, %arg5: memref<128x128xbf16, #tpu.memory_space<vmem>>, %arg6: memref<128x4xf32, #tpu.memory_space<vmem>>, %arg7: memref<4x128xf32, #tpu.memory_space<vmem>>) attributes {dimension_semantics = [#tpu.dimension_semantics<parallel>], iteration_bounds = array<i64: 3>, scalar_prefetch = 0 : i64, scratch_operands = 0 : i64, tpu.core_type = #tpu.core_type<tc>, window_params = [{transform_indices = @transform_0, window_bounds = array<i64: 128, 128>}, {pipeline_mode = #tpu.pipeline_mode<synchronous>, transform_indices = @transform_1, window_bounds = array<i64: 128, 128>}, {pipeline_mode = #tpu.pipeline_mode<synchronous>, transform_indices = @transform_2, window_bounds = array<i64: 128, 4>}, {pipeline_mode = #tpu.pipeline_mode<synchronous>, transform_indices = @transform_3, window_bounds = array<i64: 4, 128>}, {transform_indices = @transform_4, window_bounds = array<i64: 128, 128>}, {transform_indices = @transform_5, window_bounds = array<i64: 128, 4>}, {transform_indices = @transform_6, window_bounds = array<i64: 4, 128>}]} {
    %c0 = arith.constant 0 : index
    %c0_0 = arith.constant 0 : index
    %0 = vector.load %arg1[%c0, %c0_0] : memref<128x128xf32, #tpu.memory_space<vmem>>, vector<128x128xf32>
    %c0_1 = arith.constant 0 : index
    %c0_2 = arith.constant 0 : index
    %1 = vector.load %arg2[%c0_1, %c0_2] : memref<128x128xf32, #tpu.memory_space<vmem>>, vector<128x128xf32>
    %cst = arith.constant dense<0.000000e+00> : vector<128x128xf32>
    %2 = tpu.matmul %0, %1, %cst {dimension_numbers = #tpu.dot_dimension_numbers<[1], [0], [0], [1], [0, 0, 1, 1], [], []>} : vector<128x128xf32>, vector<128x128xf32>, vector<128x128xf32> -> vector<128x128xf32>
    %3 = arith.truncf %2 : vector<128x128xf32> to vector<128x128xbf16>
    %c0_3 = arith.constant 0 : index
    %c0_4 = arith.constant 0 : index
    %4 = vector.load %arg5[%c0_3, %c0_4] : memref<128x128xbf16, #tpu.memory_space<vmem>>, vector<128x128xbf16>
    tpu.vector_store %arg5[%c0_3, %c0_4], %3 {strides = array<i32>} : memref<128x128xbf16, #tpu.memory_space<vmem>>, vector<128x128xbf16>,
    %c0_5 = arith.constant 0 : index
    %c0_6 = arith.constant 0 : index
    %5 = vector.load %arg3[%c0_5, %c0_6] : memref<128x4xf32, #tpu.memory_space<vmem>>, vector<128x4xf32>
    %cst_7 = arith.constant dense<0.000000e+00> : vector<128x4xf32>
    %6 = tpu.matmul %0, %5, %cst_7 {dimension_numbers = #tpu.dot_dimension_numbers<[1], [0], [0], [1], [0, 0, 1, 1], [], []>} : vector<128x128xf32>, vector<128x4xf32>, vector<128x4xf32> -> vector<128x4xf32>
    %c0_8 = arith.constant 0 : index
    %c0_9 = arith.constant 0 : index
    %7 = vector.load %arg6[%c0_8, %c0_9] : memref<128x4xf32, #tpu.memory_space<vmem>>, vector<128x4xf32>
    tpu.vector_store %arg6[%c0_8, %c0_9], %6 {strides = array<i32>} : memref<128x4xf32, #tpu.memory_space<vmem>>, vector<128x4xf32>,
    %c0_10 = arith.constant 0 : index
    %c0_11 = arith.constant 0 : index
    %8 = vector.load %arg4[%c0_10, %c0_11] : memref<4x128xf32, #tpu.memory_space<vmem>>, vector<4x128xf32>
    "tpu.trace_start"() <{level = 10 : i32, message = "hf,nf->hn"}> : () -> ()
    %cst_12 = arith.constant dense<0.000000e+00> : vector<4x128xf32>
    %9 = tpu.matmul %8, %0, %cst_12 {dimension_numbers = #tpu.dot_dimension_numbers<[1], [1], [0], [0], [0, 0, 1, 0], [], []>} : vector<4x128xf32>, vector<128x128xf32>, vector<4x128xf32> -> vector<4x128xf32>
    "tpu.trace_stop"() : () -> ()
    %c0_13 = arith.constant 0 : index
    %c0_14 = arith.constant 0 : index
    %10 = vector.load %arg7[%c0_13, %c0_14] : memref<4x128xf32, #tpu.memory_space<vmem>>, vector<4x128xf32>
    tpu.vector_store %arg7[%c0_13, %c0_14], %9 {strides = array<i32>} : memref<4x128xf32, #tpu.memory_space<vmem>>, vector<4x128xf32>,
    return
  }
  func.func @transform_0(%arg0: i32) -> (i32, i32) {
    %c0_i32 = arith.constant 0 : i32
    %c0_i32_0 = arith.constant 0 : i32
    return %arg0, %c0_i32 : i32, i32
  }
  func.func @transform_1(%arg0: i32) -> (i32, i32) {
    %c0_i32 = arith.constant 0 : i32
    %c0_i32_0 = arith.constant 0 : i32
    %c0_i32_1 = arith.constant 0 : i32
    return %c0_i32, %c0_i32_0 : i32, i32
  }
  func.func @transform_2(%arg0: i32) -> (i32, i32) {
    %c0_i32 = arith.constant 0 : i32
    %c0_i32_0 = arith.constant 0 : i32
    %c0_i32_1 = arith.constant 0 : i32
    return %c0_i32, %c0_i32_0 : i32, i32
  }
  func.func @transform_3(%arg0: i32) -> (i32, i32) {
    %c0_i32 = arith.constant 0 : i32
    %c0_i32_0 = arith.constant 0 : i32
    %c0_i32_1 = arith.constant 0 : i32
    return %c0_i32, %c0_i32_0 : i32, i32
  }
  func.func @transform_4(%arg0: i32) -> (i32, i32) {
    %c0_i32 = arith.constant 0 : i32
    %c0_i32_0 = arith.constant 0 : i32
    return %arg0, %c0_i32 : i32, i32
  }
  func.func @transform_5(%arg0: i32) -> (i32, i32) {
    %c0_i32 = arith.constant 0 : i32
    %c0_i32_0 = arith.constant 0 : i32
    return %arg0, %c0_i32 : i32, i32
  }
  func.func @transform_6(%arg0: i32) -> (i32, i32) {
    %c0_i32 = arith.constant 0 : i32
    %c0_i32_0 = arith.constant 0 : i32
    return %c0_i32, %arg0 : i32, i32
  }
}

</mosaic_0001>

<bundles_post_ra>
// kernel: tpu_custom_call.1
= control target key start
LH: loop header
LB: loop body
LE: loop exit
PB: predicated region body
PF: predicated region fallthrough
CT: control target
= control target key end

     0   :  { %12 = vsyncpa [#allocation3], 0  ;;  %s2047_s0 = inlined_call_operand.hbm [shape: f32[384,128], index: 0, kind: input, shape index: {}]   ;;  %s2048_s1 = inlined_call_operand.vmem [shape: f32[128,128], index: 1, kind: input, shape index: {}]   ;;  %s2049_s2 = inlined_call_operand.vmem [shape: f32[128,4], index: 2, kind: input, shape index: {}]   ;;  %s2050_s3 = inlined_call_operand.vmem [shape: f32[4,128], index: 3, kind: input, shape index: {}]   ;;  %s2051_s4 = inlined_call_operand.hbm [shape: bf16[384,128], index: 4, kind: output, shape index: {0}]   ;;  %s2052_s5 = inlined_call_operand.vmem [shape: f32[384,4], index: 5, kind: output, shape index: {1}]   ;;  %s2053_s6 = inlined_call_operand.hbm [shape: f32[4,384], index: 6, kind: output, shape index: {2}]  }
   0x1   :  { %14 = vsyncpa [#allocation3 + $0x1], 0 }
   0x2   :  { %15 = vsyncpa [#allocation4], 0 }
   0x3   :  { %17 = vsyncpa [#allocation4 + $0x1], 0 }
   0x4   :  { %18 = vsyncpa [#allocation7], 0 }
   0x5   :  { %20 = vsyncpa [#allocation7 + $0x1], 0  ;;  %s1623_s21 = smov 0   ;;  %s1625_s22 = smov 0  }
   0x6   :  { %s1627_s23 = smov 0   ;;  %s1629_s24 = smov 0  }
   0x7 LB: > { %s1644_s25 = sadd.s32 4294967295, %s1576_s24   ;;  %s974_s26 = sadd.s32 4294967294, %s1576_s24   ;;  %s1576_s24 = sphi %s1629_s24, %s2066_s24   ;;  %s1572_s23 = sphi %s1627_s23, %s2065_s23   ;;  %s1568_s22 = sphi %s1625_s22, %s2064_s22   ;;  %s1564_s21 = sphi %s1623_s21, %s2063_s21  }
   0x8   : > { %s1648_s27 = sadd.s32 1, %s1576_s24   ;;  %s33_s28 = sadd.s32 1, %s1572_s23 }
   0x9   : > { %s30_s29 = ssub.s32 %s1576_s24, %s1648_s27  ;;  %p40_p0 = scmp.ne.s32.totalorder %s1572_s23, %s1568_s22 }
   0xa   : > { %p31_p1 = scmp.eq.s32.totalorder %s30_s29, 0  ;;  %p41_p2 = scmp.eq.s32.totalorder %s1576_s24, 0 }
   0xb   : > { %p46_p3 = scmp.ne.s32.totalorder %s1568_s22, %s1564_s21  ;;  %p47_p4 = scmp.eq.s32.totalorder %s1644_s25, 0 }
   0xc   : > { %s1660_s30 = scalar_select %p31_p1, %s1572_s23, %s33_s28  }
   0xd   : > { %p1662_p5 = por %p41_p2, %p40_p0  ;;  %p1666_p6 = por %p47_p4, %p46_p3 }
   0xe   : > { %p133_p7 = scmp.eq.s32.totalorder %s1644_s25, 2  ;;  %p139_p8 = scmp.eq.s32.totalorder %s974_s26, 2 }
   0xf   : > { %p1407_p9 = scmp.lt.s32.totalorder %s1576_s24, 3  ;;  %s220_s11 = sand.u32 1, %s1572_s23  }
  0x10   : > { %p1672_p10 = por %p133_p7, %p40_p0  ;;  %p1676_p11 = por %p139_p8, %p46_p3 }
  0x11   : > { %s1009_s12 = sshll.u32 %s1576_s24, 11  ;;  %s977_s13 = sshll.u32 %s220_s11, 7 }
  0x12   : > { %s2057_s9 = scalar_select %p1672_p10, 1, 0 }
  0x13   : > { %s2058_s10 = scalar_select %p1676_p11, 1, 0 }
  0x14   : > { %s1685_s16 = scalar_lea.hbm %s2047_s0, %s1009_s12  ;;  %s224_s17 = scalar_lea.vmem [#allocation2], %s977_s13 }
  0x15   : > { %s231_s18 = sshll.u32 %s224_s17, 4  ;;  %p1689_p12 = pnand %p1407_p9, %p1662_p5  ;;  %s1693_s18 = int_to_ptr.vmem [resolvable:$true] %s231_s18 }
  0x16   : > { %s1695_s20 = scalar_lea.sflag [#allocation3], %s220_s11  ;;  %s1448_s26 = scalar_lea.hbm %s1685_s16, 2048 }
  0x17   : > { %p1449_p13 = scmp.ne.s32.totalorder %s1685_s16, %s1448_s26  ;;  %p1450_p0 = pneg %p1689_p12 }
  0x18   : > { %s1453_s7 = scalar_lea.hbm %s2047_s0, 6144  ;;  %p1454_p3 = scmp.lt.u32.totalorder %s1685_s16, %s2047_s0 }
  0x19   : > { %p1451_p1 = pnand %p1450_p0, %p1449_p13  ;;  %p1455_p4 = scmp.lt.u32.totalorder %s1453_s7, %s1448_s26 }
  0x1a   : > { %p1457_p7 = scmp.lt.u32.totalorder %s1448_s26, %s1685_s16 }
  0x1b   : > { %p1452_p2 = pneg %p1451_p1  ;;  %p1456_p5 = por %p1455_p4, %p1454_p3 }
  0x1d   : > { %p1458_p8 = por %p1457_p7, %p1456_p5 }
  0x1f   : > { %p1459_p9 = pnand %p1458_p8, %p1452_p2 }
  0x21   : > { %1462 = shalt.err (!%p1459_p9)
}
  0x22   : > { %s1463_s11 = scalar_lea.vmem %s1693_s18, 2048  ;;  %s1578_s14 = smov [#allocation2]  }
  0x23   : > { %p1464_p13 = scmp.ne.s32.totalorder %s1693_s18, %s1463_s11  ;;  %s1468_s15 = sshll.u32 %s1578_s14, 4  ;;  %s1469_s15 = int_to_ptr.vmem [resolvable:$false] %s1468_s15 }
  0x24   : > { %s1470_s17 = scalar_lea.vmem %s1469_s15, 4096  ;;  %p1471_p10 = scmp.lt.s32.totalorder %s1693_s18, %s1469_s15 }
  0x25   : > { %p1466_p1 = pnand %p1464_p13, %p1450_p0  ;;  %p1472_p3 = scmp.lt.s32.totalorder %s1470_s17, %s1463_s11 }
  0x27   : > { %p1467_p11 = pneg %p1466_p1  ;;  %p1473_p4 = por %p1472_p3, %p1471_p10 }
  0x29   : > { %p1474_p5 = pnand %p1473_p4, %p1467_p11 }
  0x2b   : > { %1477 = shalt.err (!%p1474_p5)
}
  0x2c   : > { %s1579_s26 = smov 128   ;;  %s1580_s28 = smov 8  }
  0x2d   : > { %1399 = dma.hbm_to_vmem [thread:$0]  (!%p1689_p12), %s1685_s16, 2048, %s1693_s18, %s1695_s20, %s1579_s26, %s1579_s26, %s1580_s28  }
  0x2e   : > { %p980_p0 = scmp.ge.s32.totalorder %s1576_s24, 1  ;;  %p239_p2 = scmp.lt.s32.totalorder %s1576_s24, 4 }
  0x30   : > { %p240_p7 = pnand %p980_p0, %p239_p2 }
  0x31   : > { %s1726_s29 = sand.u32 (!%p240_p7), 1, %s1568_s22  }
  0x32   : > { %243 = sbr.rel (%p240_p7) target bundleno = 393 (0x189), region = 36  ;;  %s981_s7 = sshll.u32 (!%p240_p7), %s1726_s29, 7 }
  0x33   : > { %s246_s12 = scalar_lea.sflag (!%p240_p7), [#allocation3], %s1726_s29  ;;  %s1730_s13 = scalar_lea.vmem (!%p240_p7), [#allocation2], %s981_s7 }
  0x39   : > { %1551 = dma.done.wait (%p1666_p6), %s246_s12, 2048  }
  0x3a   : > { %1553 = vsyncadd (%p1666_p6), %s246_s12, 4294965248  ;;  %v1581_v0 = vmov 0.0|0.0   ;;  %vm1582_vm0 = vmmov 0   ;;  %v1583_v1 = vmov 0.0   ;;  %v312_v2 = vld [vmem:[%s2048_s1] sm:$0xff]  ;;  %v313_v3 = vld [vmem:[%s2048_s1 + $0x8] sm:$0xff] }
  0x3b   : > { %1366 = vmatprep.subr.bf16.mxu0 %v1581_v0  ;;  %1299 = vmatprep.mubr.msk.f32.mxu0 %vm1582_vm0, %v1583_v1  ;;  %v314_v4 = vld [vmem:[%s2048_s1 + $0x10] sm:$0xff]  ;;  %v1302_v5 = vpack.c.bf16 %v313_v3, %v312_v2  ;;  %v315_v6 = vld [vmem:[%s2048_s1 + $0x18] sm:$0xff]  ;;  %v316_v8 = vld [vmem:[%s2048_s1 + $0x20] sm:$0xff]  ;;  %s984_s19 = sshll.u32 %s1644_s25, 4  ;;  %s983_s14 = sshll.u32 %s1726_s29, 2  ;;  %vm714_vm1 = vcmask 31744  }
  0x3c   : > { %v1306_v7 = vpack.c.bf16 %v315_v6, %v314_v4  ;;  %v317_v9 = vld [vmem:[%s2048_s1 + $0x28] sm:$0xff]  ;;  %v1756_v11 = vld [vmem:[%s1730_s13] sm:$0xff]  ;;  %v318_v13 = vld [vmem:[%s2048_s1 + $0x30] sm:$0xff]  ;;  %p291_p6 = scmp.lt.s32.totalorder %s984_s19, 47  ;;  %s1026_s8 = sshll.u32 %s1644_s25, 10 }
  0x3d   : > { %1303 = vmatprep.subr.bf16.mxu1 %v1302_v5  ;;  %v1310_v10 = vpack.c.bf16 %v317_v9, %v316_v8  ;;  %v1759_v12 = vld [vmem:[%s1730_s13 + $0x8] sm:$0xff]  ;;  %v319_v14 = vld [vmem:[%s2048_s1 + $0x38] sm:$0xff]  ;;  %1187 = vmatprep.mubr.f32.mxu1 %v1756_v11  ;;  %v1771_v17 = vld [vmem:[%s1730_s13 + $0x10] sm:$0xff]  ;;  %s1933_s12 = scalar_lea.hbm %s2051_s4, %s1026_s8  ;;  %s1936_s16 = scalar_lea.vmem [#allocation6], %s983_s14 }
  0x3e   : > { %1305 = vmatpush3.bf16.msra.mxu1 %v1302_v5  ;;  %v1367_v15 = vpack.c.bf16 %v1759_v12, %v1756_v11  ;;  %v1314_v16 = vpack.c.bf16 %v319_v14, %v318_v13  ;;  %v1774_v18 = vld [vmem:[%s1730_s13 + $0x18] sm:$0xff]  ;;  %v320_v19 = vld [vmem:[%s2048_s1 + $0x40] sm:$0xff]  ;;  %v321_v20 = vld [vmem:[%s2048_s1 + $0x48] sm:$0xff]  ;;  %s2068_s19 = smov (!%p291_p6, %s984_s19), 47  ;;  %p2060_p11 = scmp.ne.s32.totalorder %s2057_s9, 0 }
  0x3f   : > { %1307 = vmatprep.subr.bf16.mxu1 %v1306_v7  ;;  %v1370_v21 = vpack.c.bf16 %v1774_v18, %v1771_v17  ;;  %v1318_v22 = vpack.c.bf16 %v321_v20, %v320_v19  ;;  %v322_v23 = vld [vmem:[%s2048_s1 + $0x50] sm:$0xff]  ;;  %v323_v24 = vld [vmem:[%s2048_s1 + $0x58] sm:$0xff]  ;;  %v324_v26 = vld [vmem:[%s2048_s1 + $0x60] sm:$0xff]  ;;  %s985_s11 = sshll.u32 %s2068_s19, 3  ;;  %s1584_s8 = smov [#allocation5]  }
  0x40   : > { %1368 = vmatpush3.bf16.xpose.msra.mxu0 %v1367_v15  ;;  %v1322_v25 = vpack.c.bf16 %v323_v24, %v322_v23  ;;  %v325_v27 = vld [vmem:[%s2048_s1 + $0x68] sm:$0xff]  ;;  %v1799_v28 = vld [vmem:[%s1730_s13 + $0x20] sm:$0xff]  ;;  %v326_v32 = vld [vmem:[%s2048_s1 + $0x70] sm:$0xff]  ;;  %s1928_s26 = scalar_lea.vmem %s2052_s5, %s985_s11  ;;  %s804_s11 = scalar_lea.sflag [#allocation4], %s1726_s29 }
  0x41   : > { %1369 = vmatprep.subr.bf16.mxu0 %v1581_v0  ;;  %v1802_v29 = vld [vmem:[%s1730_s13 + $0x28] sm:$0xff]  ;;  %v1326_v31 = vpack.c.bf16 %v325_v27, %v324_v26  ;;  %v327_v33 = vld [vmem:[%s2048_s1 + $0x78] sm:$0xff]  ;;  %v553_v35 = vld [vmem:[%s2049_s2] sm:$0xff]  ;;  %s1482_s17 = sshll.u32 %s1584_s8, 4  ;;  %s1483_s17 = int_to_ptr.vmem [resolvable:$false] %s1482_s17 }
  0x42   : > { %1309 = vmatpush3.bf16.msra.mxu1 %v1306_v7  ;;  %v1373_v30 = vpack.c.bf16 %v1802_v29, %v1799_v28  ;;  %v1330_v34 = vpack.c.bf16 %v327_v33, %v326_v32  ;;  %v554_v36 = vld [vmem:[%s2049_s2 + $0x8] sm:$0xff]  ;;  %v1820_v37 = vld [vmem:[%s1730_s13 + $0x30] sm:$0xff]  ;;  %v1823_v38 = vld [vmem:[%s1730_s13 + $0x38] sm:$0xff] }
  0x43   : > { %1311 = vmatprep.subr.bf16.mxu1 %v1310_v10  ;;  %v1376_v39 = vpack.c.bf16 %v1823_v38, %v1820_v37  ;;  %v1334_v40 = vpack.c.bf16 %v554_v36, %v553_v35  ;;  %v555_v41 = vld [vmem:[%s2049_s2 + $0x10] sm:$0xff]  ;;  %v556_v42 = vld [vmem:[%s2049_s2 + $0x18] sm:$0xff]  ;;  %v557_v44 = vld [vmem:[%s2049_s2 + $0x20] sm:$0xff] }
  0x44   : > { %v1338_v43 = vpack.c.bf16 %v556_v42, %v555_v41  ;;  %v558_v45 = vld [vmem:[%s2049_s2 + $0x28] sm:$0xff]  ;;  %v1843_v46 = vld [vmem:[%s1730_s13 + $0x40] sm:$0xff]  ;;  %v559_v50 = vld [vmem:[%s2049_s2 + $0x30] sm:$0xff] }
  0x45   : > { %v1846_v47 = vld [vmem:[%s1730_s13 + $0x48] sm:$0xff]  ;;  %v1342_v48 = vpack.c.bf16 %v558_v45, %v557_v44  ;;  %v560_v51 = vld [vmem:[%s2049_s2 + $0x38] sm:$0xff]  ;;  %v561_v53 = vld [vmem:[%s2049_s2 + $0x40] sm:$0xff] }
  0x46   : > { %1313 = vmatpush3.bf16.msra.mxu1 %v1310_v10  ;;  %v1379_v49 = vpack.c.bf16 %v1846_v47, %v1843_v46  ;;  %v1346_v52 = vpack.c.bf16 %v560_v51, %v559_v50  ;;  %v562_v54 = vld [vmem:[%s2049_s2 + $0x48] sm:$0xff]  ;;  %v306_v55 = vld [vmem:[%s1730_s13 + $0x50] sm:$0xff]  ;;  %v307_v56 = vld [vmem:[%s1730_s13 + $0x58] sm:$0xff] }
  0x47   : > { %1315 = vmatprep.subr.bf16.mxu1 %v1314_v16  ;;  %v1350_v57 = vpack.c.bf16 %v562_v54, %v561_v53  ;;  %v1382_v58 = vpack.c.bf16 %v307_v56, %v306_v55  ;;  %v563_v59 = vld [vmem:[%s2049_s2 + $0x50] sm:$0xff]  ;;  %v564_v60 = vld [vmem:[%s2049_s2 + $0x58] sm:$0xff]  ;;  %v565_v62 = vld [vmem:[%s2049_s2 + $0x60] sm:$0xff] }
  0x48   : > { %1371 = vmatpush3.bf16.xpose.msra.mxu0 %v1370_v21  ;;  %v1354_v61 = vpack.c.bf16 %v564_v60, %v563_v59  ;;  %v566_v63 = vld [vmem:[%s2049_s2 + $0x68] sm:$0xff]  ;;  %v308_v1 = vld [vmem:[%s1730_s13 + $0x60] sm:$0xff]  ;;  %v567_v5 = vld [vmem:[%s2049_s2 + $0x70] sm:$0xff] }
  0x49   : > { %1372 = vmatprep.subr.bf16.mxu0 %v1581_v0  ;;  %v309_v2 = vld [vmem:[%s1730_s13 + $0x68] sm:$0xff]  ;;  %v1358_v3 = vpack.c.bf16 %v566_v63, %v565_v62  ;;  %v568_v6 = vld [vmem:[%s2049_s2 + $0x78] sm:$0xff]  ;;  %v310_v7 = vld [vmem:[%s1730_s13 + $0x70] sm:$0xff] }
  0x4a   : > { %1317 = vmatpush3.bf16.msra.mxu1 %v1314_v16  ;;  %v1385_v4 = vpack.c.bf16 %v309_v2, %v308_v1  ;;  %v1362_v8 = vpack.c.bf16 %v568_v6, %v567_v5  ;;  %v311_v9 = vld [vmem:[%s1730_s13 + $0x78] sm:$0xff]  ;;  %s982_s13 = sshll.u32 %s1726_s29, 6 }
  0x4b   : > { %1319 = vmatprep.subr.bf16.mxu1 %v1318_v22  ;;  %v1388_v10 = vpack.c.bf16 %v311_v9, %v310_v7  ;;  %s1910_s18 = scalar_lea.vmem [#allocation5], %s982_s13  ;;  %s847_s13 = sshll.u32 %s1936_s16, 4  ;;  %s1970_s13 = int_to_ptr.vmem [resolvable:$true] %s847_s13 }
  0x4c   : > { %s827_s20 = sshll.u32 %s1910_s18, 4  ;;  %s1922_s20 = int_to_ptr.vmem [resolvable:$true] %s827_s20 }
  0x4d   : > { %s1478_s15 = scalar_lea.vmem %s1922_s20, 1024  ;;  %p1485_p9 = scmp.lt.s32.totalorder %s1922_s20, %s1483_s17 }
  0x4e   : > { %1321 = vmatpush3.bf16.msra.mxu1 %v1318_v22  ;;  %p1479_p10 = scmp.ne.s32.totalorder %s1922_s20, %s1478_s15 }
  0x4f   : > { %1323 = vmatprep.subr.bf16.mxu1 %v1322_v25 }
  0x50   : > { %1374 = vmatpush3.bf16.xpose.msra.mxu0 %v1373_v30  ;;  %p1480_p12 = pnand %p1479_p10, %p2060_p11 }
  0x51   : > { %1375 = vmatprep.subr.bf16.mxu0 %v1581_v0 }
  0x52   : > { %1325 = vmatpush3.bf16.msra.mxu1 %v1322_v25  ;;  %p1481_p8 = pneg %p1480_p12 }
  0x53   : > { %1327 = vmatprep.subr.bf16.mxu1 %v1326_v31 }
  0x56   : > { %1329 = vmatpush3.bf16.msra.mxu1 %v1326_v31 }
  0x57   : > { %1331 = vmatprep.subr.bf16.mxu1 %v1330_v34 }
  0x58   : > { %1377 = vmatpush3.bf16.xpose.msra.mxu0 %v1376_v39 }
  0x59   : > { %1378 = vmatprep.subr.bf16.mxu0 %v1581_v0 }
  0x5a   : > { %1333 = vmatpush3.bf16.msra.mxu1 %v1330_v34 }
  0x5b   : > { %1335 = vmatprep.subr.bf16.mxu1 %v1334_v40 }
  0x5d   : > { %1188 = vmatmul.mubr.f32.vlgmr.msra.gmra.mrb[0].mxu1 %v1759_v12 }
  0x5e   : > { %1337 = vmatpush3.bf16.msra.mxu1 %v1334_v40  ;;  %1190 = vmatprep.mubr.f32.mxu1 %v1771_v17 }
  0x5f   : > { %1339 = vmatprep.subr.bf16.mxu1 %v1338_v43 }
  0x60   : > { %1380 = vmatpush3.bf16.xpose.msra.mxu0 %v1379_v49 }
  0x61   : > { %1191 = vmatmul.mubr.f32.gmra.mrb[2].mxu1 %v1774_v18  ;;  %1381 = vmatprep.subr.bf16.mxu0 %v1581_v0 }
  0x62   : > { %1341 = vmatpush3.bf16.msra.mxu1 %v1338_v43  ;;  %1193 = vmatprep.mubr.f32.mxu1 %v1799_v28 }
  0x63   : > { %1343 = vmatprep.subr.bf16.mxu1 %v1342_v48 }
  0x65   : > { %1194 = vmatmul.mubr.f32.gmra.mrb[4].mxu1 %v1802_v29 }
  0x66   : > { %1345 = vmatpush3.bf16.msra.mxu1 %v1342_v48  ;;  %1196 = vmatprep.mubr.f32.mxu1 %v1820_v37 }
  0x67   : > { %1347 = vmatprep.subr.bf16.mxu1 %v1346_v52 }
  0x68   : > { %1383 = vmatpush3.bf16.xpose.msra.mxu0 %v1382_v58 }
  0x69   : > { %1197 = vmatmul.mubr.f32.gmra.mrb[6].mxu1 %v1823_v38  ;;  %1384 = vmatprep.subr.bf16.mxu0 %v1581_v0 }
  0x6a   : > { %1349 = vmatpush3.bf16.msra.mxu1 %v1346_v52  ;;  %1199 = vmatprep.mubr.f32.mxu1 %v1843_v46 }
  0x6b   : > { %1351 = vmatprep.subr.bf16.mxu1 %v1350_v57 }
  0x6d   : > { %1200 = vmatmul.mubr.f32.gmra.mrb[8].mxu1 %v1846_v47 }
  0x6e   : > { %1353 = vmatpush3.bf16.msra.mxu1 %v1350_v57  ;;  %1202 = vmatprep.mubr.f32.mxu1 %v306_v55 }
  0x6f   : > { %1355 = vmatprep.subr.bf16.mxu1 %v1354_v61 }
  0x70   : > { %1386 = vmatpush3.bf16.xpose.msra.mxu0 %v1385_v4 }
  0x71   : > { %1203 = vmatmul.mubr.f32.gmra.mrb[10].mxu1 %v307_v56  ;;  %1387 = vmatprep.subr.bf16.mxu0 %v1581_v0  ;;  %v731_v0 = vld [vmem:[%s2050_s3] sm:$0xf] }
  0x72   : > { %1357 = vmatpush3.bf16.msra.mxu1 %v1354_v61  ;;  %1205 = vmatprep.mubr.f32.mxu1 %v308_v1 }
  0x73   : > { %1359 = vmatprep.subr.bf16.mxu1 %v1358_v3 }
  0x75   : > { %1206 = vmatmul.mubr.f32.gmra.mrb[12].mxu1 %v309_v2 }
  0x76   : > { %1361 = vmatpush3.bf16.msra.mxu1 %v1358_v3  ;;  %1208 = vmatprep.mubr.f32.mxu1 %v310_v7 }
  0x77   : > { %1363 = vmatprep.subr.bf16.mxu1 %v1362_v8 }
  0x78   : > { %1389 = vmatpush3.bf16.xpose.msra.mxu0 %v1388_v10 }
  0x79   : > { %1209 = vmatmul.mubr.f32.gmra.mrb[14].mxu1 %v311_v9 }
  0x7a   : > { %1365 = vmatpush3.bf16.msra.mxu1 %v1362_v8  ;;  %1243 = vmatprep.mubr.f32.mxu1 %v1756_v11 }
  0x7d   : > { %1244 = vmatmul.mubr.f32.vlgmr.msra.gmra.mrb[16].mxu1 %v1759_v12 }
  0x7e   : > { %1246 = vmatprep.mubr.f32.mxu1 %v1771_v17 }
  0x7f   : > { %1300 = vmatmul.mubr.f32.vlgmr.msra.gmra.mrb[0].mxu0 %v731_v0 }
  0x81   : > { %1247 = vmatmul.mubr.f32.gmra.mrb[18].mxu1 %v1774_v18 }
  0x82   : > { %1249 = vmatprep.mubr.f32.mxu1 %v1799_v28 }
  0x85   : > { %1250 = vmatmul.mubr.f32.gmra.mrb[20].mxu1 %v1802_v29 }
  0x86   : > { %1252 = vmatprep.mubr.f32.mxu1 %v1820_v37 }
  0x89   : > { %1253 = vmatmul.mubr.f32.gmra.mrb[22].mxu1 %v1823_v38 }
  0x8a   : > { %1255 = vmatprep.mubr.f32.mxu1 %v1843_v46 }
  0x8d   : > { %1256 = vmatmul.mubr.f32.gmra.mrb[24].mxu1 %v1846_v47 }
  0x8e   : > { %1258 = vmatprep.mubr.f32.mxu1 %v306_v55 }
  0x91   : > { %1259 = vmatmul.mubr.f32.gmra.mrb[26].mxu1 %v307_v56 }
  0x92   : > { %1261 = vmatprep.mubr.f32.mxu1 %v308_v1 }
  0x95   : > { %1262 = vmatmul.mubr.f32.gmra.mrb[28].mxu1 %v309_v2 }
  0x96   : > { %1264 = vmatprep.mubr.f32.mxu1 %v310_v7 }
  0x99   : > { %1265 = vmatmul.mubr.f32.gmra.mrb[30].mxu1 %v311_v9 }
 0x130   : > { %v1189_v11 = vpop.f32.mrb[0].mxu1 }
 0x131   : > { %v394_v12 = vpop.f32.mrb[1].mxu1 }
 0x132   : > { %v1030_v13 = vpack.c.bf16 %v1189_v11, %v394_v12 }
 0x134   : > { %1031 = vst [vmem:[%s1910_s18] sm:$0xff] %v1030_v13   ;;  %v1192_v14 = vpop.f32.mrb[2].mxu1 }
 0x135   : > { %v404_v15 = vpop.f32.mrb[3].mxu1 }
 0x136   : > { %v1035_v16 = vpack.c.bf16 %v1192_v14, %v404_v15 }
 0x138   : > { %1067 = vst [vmem:[%s1910_s18 + $0x8] sm:$0xff] %v1035_v16   ;;  %v1195_v17 = vpop.f32.mrb[4].mxu1 }
 0x139   : > { %v414_v18 = vpop.f32.mrb[5].mxu1 }
 0x13a   : > { %v1040_v19 = vpack.c.bf16 %v1195_v17, %v414_v18 }
 0x13c   : > { %1068 = vst [vmem:[%s1910_s18 + $0x10] sm:$0xff] %v1040_v19   ;;  %v1198_v20 = vpop.f32.mrb[6].mxu1 }
 0x13d   : > { %v424_v21 = vpop.f32.mrb[7].mxu1 }
 0x13e   : > { %v1045_v22 = vpack.c.bf16 %v1198_v20, %v424_v21 }
 0x140   : > { %1069 = vst [vmem:[%s1910_s18 + $0x18] sm:$0xff] %v1045_v22   ;;  %v1201_v23 = vpop.f32.mrb[8].mxu1 }
 0x141   : > { %v434_v24 = vpop.f32.mrb[9].mxu1 }
 0x142   : > { %v1050_v25 = vpack.c.bf16 %v1201_v23, %v434_v24 }
 0x144   : > { %1070 = vst [vmem:[%s1910_s18 + $0x20] sm:$0xff] %v1050_v25   ;;  %v1204_v26 = vpop.f32.mrb[10].mxu1 }
 0x145   : > { %v444_v27 = vpop.f32.mrb[11].mxu1 }
 0x146   : > { %v1055_v28 = vpack.c.bf16 %v1204_v26, %v444_v27 }
 0x148   : > { %1071 = vst [vmem:[%s1910_s18 + $0x28] sm:$0xff] %v1055_v28   ;;  %v1207_v29 = vpop.f32.mrb[12].mxu1 }
 0x149   : > { %v454_v30 = vpop.f32.mrb[13].mxu1 }
 0x14a   : > { %v1060_v31 = vpack.c.bf16 %v1207_v29, %v454_v30 }
 0x14c   : > { %1072 = vst [vmem:[%s1910_s18 + $0x30] sm:$0xff] %v1060_v31   ;;  %v1210_v32 = vpop.f32.mrb[14].mxu1 }
 0x14d   : > { %v464_v33 = vpop.f32.mrb[15].mxu1 }
 0x14e   : > { %v1065_v34 = vpack.c.bf16 %v1210_v32, %v464_v33 }
 0x150   : > { %1073 = vst [vmem:[%s1910_s18 + $0x38] sm:$0xff] %v1065_v34   ;;  %v1245_v35 = vpop.f32.mrb[16].mxu1  ;;  %s1484_s18 = scalar_lea.vmem %s1483_s17, 2048 }
 0x151   : > { %716 = vst.msk [vmem:[%s1928_s26 + $0x8] sm:$0xff] %vm714_vm1, %v1245_v35  ;;  %v635_v36 = vpop.f32.mrb[17].mxu1  ;;  %p1486_p13 = scmp.lt.s32.totalorder %s1484_s18, %s1478_s15 }
 0x153   : > { %p1487_p1 = por %p1486_p13, %p1485_p9 }
 0x155   : > { %p1488_p3 = pnand %p1487_p1, %p1481_p8 }
 0x157   : > { %1491 = shalt.err (!%p1488_p3)
}
 0x158   : > { %s1492_s14 = scalar_lea.hbm %s1933_s12, 1024  ;;  %s1496_s8 = scalar_lea.hbm %s2051_s4, 3072 }
 0x159   : > { %p1493_p4 = scmp.ne.s32.totalorder %s1933_s12, %s1492_s14  ;;  %p1497_p2 = scmp.lt.u32.totalorder %s1933_s12, %s2051_s4 }
 0x15a   : > { %p1498_p7 = scmp.lt.u32.totalorder %s1496_s8, %s1492_s14  ;;  %p1500_p10 = scmp.lt.u32.totalorder %s1492_s14, %s1933_s12 }
 0x15b   : > { %p1494_p5 = pnand %p1493_p4, %p2060_p11 }
 0x15c   : > { %p1499_p6 = por %p1498_p7, %p1497_p2 }
 0x15d   : > { %p1495_p0 = pneg %p1494_p5 }
 0x15e   : > { %p1501_p12 = por %p1500_p10, %p1499_p6 }
 0x160   : > { %p1502_p8 = pnand %p1501_p12, %p1495_p0 }
 0x162   : > { %1505 = shalt.err (!%p1502_p8)
}
 0x163   : > { %s1585_s15 = smov 64   ;;  %s1586_s19 = smov 4   ;;  %715 = vst.msk [vmem:[%s1928_s26] sm:$0xff] %vm714_vm1, %v635_v36  ;;  %v1248_v37 = vpop.f32.mrb[18].mxu1  ;;  %v798_v39 = vpop.f32.mrb[0].mxu0 }
 0x164   : > { %1392 = dma.vmem_to_hbm [thread:$0]  (%p2060_p11), %s1922_s20, 1024, %s1933_s12, %s804_s11, %s1585_s15, %s1585_s15, %s1586_s19   ;;  %v645_v38 = vpop.f32.mrb[19].mxu1  ;;  %v1301_v40 = vpop.f32.mrb[1].mxu0 }
 0x165   : > { %s2061_s18 = sshll.u32 %s1644_s25, 6  ;;  %718 = vst.msk [vmem:[%s1928_s26 + $0x18] sm:$0xff] %vm714_vm1, %v1248_v37  ;;  %717 = vst.msk [vmem:[%s1928_s26 + $0x10] sm:$0xff] %vm714_vm1, %v645_v38  ;;  %s814_s20 = scalar_lea.sflag [#allocation7], %s1726_s29 }
 0x166   : > { %s1977_s7 = scalar_lea.hbm %s2053_s6, %s2061_s18  ;;  %802 = vst [vmem:[%s1936_s16] sm:$0xf] %v798_v39  ;;  %s1506_s12 = scalar_lea.vmem %s1970_s13, 64 }
 0x167   : > { %p1507_p9 = scmp.ne.s32.totalorder %s1970_s13, %s1506_s12  ;;  %s1587_s25 = smov [#allocation6]  }
 0x168   : > { %s1510_s11 = sshll.u32 %s1587_s25, 4  ;;  %s1511_s11 = int_to_ptr.vmem [resolvable:$false] %s1510_s11 }
 0x169   : > { %p1508_p13 = pnand %p1507_p9, %p2060_p11  ;;  %s1512_s8 = scalar_lea.vmem %s1511_s11, 128 }
 0x16a   : > { %p1513_p3 = scmp.lt.s32.totalorder %s1970_s13, %s1511_s11  ;;  %p1514_p4 = scmp.lt.s32.totalorder %s1512_s8, %s1506_s12 }
 0x16b   : > { %p1509_p1 = pneg %p1508_p13 }
 0x16c   : > { %p1515_p5 = por %p1514_p4, %p1513_p3 }
 0x16e   : > { %p1516_p0 = pnand %p1515_p5, %p1509_p1 }
 0x170   : > { %1519 = shalt.err (!%p1516_p0)
}
 0x171   : > { %s1520_s29 = scalar_lea.hbm %s1977_s7, 64  ;;  %s1524_s15 = scalar_lea.hbm %s2053_s6, 192 }
 0x172   : > { %p1521_p2 = scmp.ne.s32.totalorder %s1977_s7, %s1520_s29  ;;  %p1525_p10 = scmp.lt.u32.totalorder %s1977_s7, %s2053_s6 }
 0x173   : > { %p1526_p12 = scmp.lt.u32.totalorder %s1524_s15, %s1520_s29  ;;  %p1528_p9 = scmp.lt.u32.totalorder %s1520_s29, %s1977_s7 }
 0x174   : > { %p1522_p7 = pnand %p1521_p2, %p2060_p11 }
 0x175   : > { %p1527_p8 = por %p1526_p12, %p1525_p10 }
 0x176   : > { %p1523_p6 = pneg %p1522_p7 }
 0x177   : > { %p1529_p13 = por %p1528_p9, %p1527_p8 }
 0x179   : > { %p1530_p1 = pnand %p1529_p13, %p1523_p6 }
 0x17b   : > { %1533 = shalt.err (!%p1530_p1)
}
 0x17c   : > { %1393 = dma.vmem_to_hbm [thread:$0]  (%p2060_p11), %s1970_s13, 64, %s1977_s7, %s814_s20   ;;  %v1251_v41 = vpop.f32.mrb[20].mxu1 }
 0x17d   : > { %720 = vst.msk [vmem:[%s1928_s26 + $0x28] sm:$0xff] %vm714_vm1, %v1251_v41  ;;  %v655_v42 = vpop.f32.mrb[21].mxu1 }
 0x17e   : > { %719 = vst.msk [vmem:[%s1928_s26 + $0x20] sm:$0xff] %vm714_vm1, %v655_v42  ;;  %v1254_v43 = vpop.f32.mrb[22].mxu1 }
 0x17f   : > { %722 = vst.msk [vmem:[%s1928_s26 + $0x38] sm:$0xff] %vm714_vm1, %v1254_v43  ;;  %v665_v44 = vpop.f32.mrb[23].mxu1 }
 0x180   : > { %721 = vst.msk [vmem:[%s1928_s26 + $0x30] sm:$0xff] %vm714_vm1, %v665_v44  ;;  %v1257_v45 = vpop.f32.mrb[24].mxu1 }
 0x181   : > { %724 = vst.msk [vmem:[%s1928_s26 + $0x48] sm:$0xff] %vm714_vm1, %v1257_v45  ;;  %v675_v46 = vpop.f32.mrb[25].mxu1 }
 0x182   : > { %723 = vst.msk [vmem:[%s1928_s26 + $0x40] sm:$0xff] %vm714_vm1, %v675_v46  ;;  %v1260_v47 = vpop.f32.mrb[26].mxu1 }
 0x183   : > { %726 = vst.msk [vmem:[%s1928_s26 + $0x58] sm:$0xff] %vm714_vm1, %v1260_v47  ;;  %v685_v48 = vpop.f32.mrb[27].mxu1 }
 0x184   : > { %725 = vst.msk [vmem:[%s1928_s26 + $0x50] sm:$0xff] %vm714_vm1, %v685_v48  ;;  %v1263_v49 = vpop.f32.mrb[28].mxu1 }
 0x185   : > { %728 = vst.msk [vmem:[%s1928_s26 + $0x68] sm:$0xff] %vm714_vm1, %v1263_v49  ;;  %v695_v50 = vpop.f32.mrb[29].mxu1 }
 0x186   : > { %727 = vst.msk [vmem:[%s1928_s26 + $0x60] sm:$0xff] %vm714_vm1, %v695_v50  ;;  %v1266_v51 = vpop.f32.mrb[30].mxu1 }
 0x187   : > { %730 = vst.msk [vmem:[%s1928_s26 + $0x78] sm:$0xff] %vm714_vm1, %v1266_v51  ;;  %v705_v52 = vpop.f32.mrb[31].mxu1 }
 0x188   : > { %729 = vst.msk [vmem:[%s1928_s26 + $0x70] sm:$0xff] %vm714_vm1, %v705_v52 }
 0x189 PF: > { %p1408_p11 = scmp.ge.s32.totalorder %s1576_s24, 2  ;;  %s859_s9 = sand.u32 1, %s1564_s21  }
 0x18a   : > { %p2062_p3 = scmp.ne.s32.totalorder %s2058_s10, 0  ;;  %s860_s13 = scalar_lea.sflag [#allocation4], %s859_s9 }
 0x18c   : > { %p1401_p4 = pnand %p1408_p11, %p2062_p3 }
 0x18e   : > { %1555 = dma.done.wait (!%p1401_p4), %s860_s13, 1024  }
 0x18f   : > { %1557 = vsyncadd (!%p1401_p4), %s860_s13, 4294966272  ;;  %s877_s14 = scalar_lea.sflag [#allocation7], %s859_s9 }
 0x190   : > { %1559 = dma.done.wait (!%p1401_p4), %s877_s14, 64  }
 0x191   : > { %1561 = vsyncadd (!%p1401_p4), %s877_s14, 4294967232  ;;  %p23_p5 = scmp.ge.s32.totalorder %s1648_s27, 5   ;;  %s2063_s21 = smov %s1568_s22 }
 0x192   : > { %s2064_s22 = smov %s1572_s23  ;;  %s2065_s23 = smov %s1660_s30 }
 0x193   : > { %s2066_s24 = smov %s1648_s27  ;;  %25 = sbr.rel (!%p23_p5) target bundleno = 7 (0x7), region = 110 }
 0x19a   :  { %882 = vsyncpa [#allocation3], 1 }
 0x19b   :  { %884 = vsyncpa [#allocation3 + $0x1], 1 }
 0x19c   :  { %885 = vsyncpa [#allocation4], 1 }
 0x19d   :  { %887 = vsyncpa [#allocation4 + $0x1], 1 }
 0x19e   :  { %888 = vsyncpa [#allocation7], 1 }
 0x19f   :  { %890 = vsyncpa [#allocation7 + $0x1], 1 }

</bundles_post_ra>
